<compile_context>
chip_gen: v7x
topology: tpu7x:2x2x1
jax: 0.10.0
libtpu: 0.0.40
codegen_flags: <defaults>
</compile_context>

<pallas_src>
import functools

import jax
import jax.numpy as jnp
from jax.experimental import pallas as pl
from jax.experimental.pallas import tpu as pltpu


def _round_up(v, m):
    return (v + m - 1) // m * m


def _proj_kernel(x_ref, w_ref, b_ref, c_ref, m_ref, o_ref):
    """One row tile: MXU projection + f32 bias epilogue + CLS-row select.

    x_ref: (tm, Kp) patch rows (CLS rows are zero and get overwritten)
    w_ref: (Kp, Ep) projection weights (constant block -> resident)
    b_ref: (1, Ep)  f32 conv bias
    c_ref: (1, Ep)  f32 CLS token
    m_ref: (tm, 1)  f32 CLS-row indicator (1.0 on CLS rows)
    o_ref: (tm, Ep) rows of the CLS-concatenated embedding
    """
    acc = jnp.dot(x_ref[...], w_ref[...], preferred_element_type=jnp.float32)
    acc = acc + b_ref[...]                      # bias epilogue on the VPU (slack slot)
    is_cls = m_ref[...] > 0.5                   # (tm, 1)
    cls_full = jnp.broadcast_to(c_ref[...], acc.shape)
    mask_full = jnp.broadcast_to(is_cls, acc.shape)
    o_ref[...] = jnp.where(mask_full, cls_full, acc).astype(o_ref.dtype)


def _select_tile_and_vmem(tm_req, M1, Kp, Ep, cdt):
    """Pick a row-tile size that fits the VMEM budget and keeps >=2 grid steps."""
    isz = jnp.dtype(cdt).itemsize
    try:
        vmem_cap = int(pltpu.get_tpu_info().vmem_capacity_bytes)
    except Exception:
        vmem_cap = 64 << 20                      # safe for v5e/v6e/v7x
    budget = max(min(int(vmem_cap * 3 // 4), vmem_cap - (16 << 20)), 16 << 20)

    tm = max(8, min(_round_up(tm_req, 8), _round_up(M1, 8)))
    # >=2 grid steps when there is enough work -> both v7x TensorCores busy.
    if M1 > 8:
        tm = min(tm, _round_up(pl.cdiv(M1, 2), 8))

    # Double-buffered per-step footprint: weights (+bias/cls) are fixed,
    # activation/output/mask tiles scale with tm.  Clamp tm, not just the limit.
    fixed = 2 * Kp * Ep * isz + 2 * 2 * Ep * 4
    per_row = 2 * (Kp * isz + Ep * isz + 4)
    tm_max = max(8, (budget - fixed) // per_row // 8 * 8)
    tm = max(8, min(tm, tm_max))

    footprint = fixed + tm * per_row
    vmem_limit = int(min(max(footprint + (4 << 20), 32 << 20), vmem_cap))
    return tm, vmem_limit


def _tiled_projection(flat, w, bias2, cls2, cls_mask, tm, vmem_limit):
    """flat: (Mp, Kp), w: (Kp, Ep); Mp % tm == 0.  Returns (Mp, Ep) in flat.dtype."""
    Mp, Kp = flat.shape
    _, Ep = w.shape
    grid = (Mp // tm,)

    return pl.pallas_call(
        _proj_kernel,
        out_shape=jax.ShapeDtypeStruct((Mp, Ep), flat.dtype),
        grid_spec=pltpu.PrefetchScalarGridSpec(
            num_scalar_prefetch=0,
            grid=grid,
            in_specs=[
                pl.BlockSpec((tm, Kp), lambda i: (i, 0)),   # activation row tiles
                # Constant block index -> not re-DMA'd across grid steps.
                # (Optional: pipeline_mode=pl.Buffered(1) to single-buffer weights.)
                pl.BlockSpec((Kp, Ep), lambda i: (0, 0)),   # weights resident
                pl.BlockSpec((1, Ep), lambda i: (0, 0)),    # f32 bias
                pl.BlockSpec((1, Ep), lambda i: (0, 0)),    # f32 CLS token
                pl.BlockSpec((tm, 1), lambda i: (i, 0)),    # CLS-row indicator
            ],
            out_specs=pl.BlockSpec((tm, Ep), lambda i: (i, 0)),
        ),
        compiler_params=pltpu.CompilerParams(
            dimension_semantics=("parallel",),   # shard row tiles across cores
            vmem_limit_bytes=vmem_limit,
            allow_input_fusion=[True, False, False, False, True],
        ),
    )(flat, w, bias2, cls2, cls_mask)


def encoder_forward(x, conv_w, conv_b, cls_token, patch_size, *,
                    tm=1024, compute_dtype=None):
    """x: (B, C, H, W) NCHW.  Returns (out0, out1) like the PyTorch module.

    out0: (B, N, E)   after conv + reshape
    out1: (B, N+1, E) after CLS-token concatenation

    compute_dtype=jnp.bfloat16 is valid on v5e/v6e/v7x (pure MXU dot + store);
    accumulation and the bias/CLS epilogue stay f32.
    """
    B, C, H, W = x.shape
    P = patch_size
    E = conv_w.shape[0]
    nH, nW = H // P, W // P
    N = nH * nW
    K = C * P * P
    M1 = B * (N + 1)

    cdt = jnp.dtype(compute_dtype) if compute_dtype is not None else jnp.dtype(x.dtype)
    Kp = _round_up(K, 128)      # lane-aligned contraction dim (no extra columns)
    Ep = _round_up(E, 128)      # lane-dense output stores

    tm, vmem_limit = _select_tile_and_vmem(tm, M1, Kp, Ep, cdt)
    Mp = _round_up(M1, tm)

    # ---- layout glue (no FLOPs): non-overlapping patch extraction ----------
    # TODO(synk): the NCHW 6-D transpose is a standalone XLA copy; pulling it
    # into the kernel would need lane-hostile (C, P, P) blocks, so it stays
    # wrapper-side (allow_input_fusion lets XLA fuse it into the operand).
    patches = (x.reshape(B, C, nH, P, nW, P)
                 .transpose(0, 2, 4, 1, 3, 5)
                 .reshape(B, N, K))

    # Matmul operand already in the final (B, N+1) row layout: CLS rows stay
    # zero and are overwritten inside the kernel.  One zeros + one static
    # update-slice; row padding only when the tile does not divide M1.
    aug = jnp.zeros((B, N + 1, Kp), cdt).at[:, 1:, :K].set(patches.astype(cdt))
    flat = aug.reshape(M1, Kp)
    cls_mask = (jnp.zeros((B, N + 1, 1), jnp.float32)
                  .at[:, 0, :].set(1.0)
                  .reshape(M1, 1))
    if Mp > M1:
        flat = jnp.pad(flat, ((0, Mp - M1), (0, 0)))
        cls_mask = jnp.pad(cls_mask, ((0, Mp - M1), (0, 0)))

    w_aug = (jnp.zeros((Kp, Ep), jnp.float32)
               .at[:K, :E].set(conv_w.reshape(E, K).T.astype(jnp.float32))
               .astype(cdt))
    bias2 = jnp.zeros((1, Ep), jnp.float32).at[0, :E].set(conv_b.astype(jnp.float32))
    cls2 = jnp.zeros((1, Ep), jnp.float32).at[0, :E].set(
        cls_token.reshape(E).astype(jnp.float32))

    # ---- hot path: tiled MXU matmul writing CLS-concatenated rows ----------
    out_flat = _tiled_projection(flat, w_aug, bias2, cls2, cls_mask, tm, vmem_limit)

    # For real ViT shapes (E % 128 == 0 and tm | M1) these slices are identities.
    # TODO(synk): callers that only need out1 should skip materializing out0.
    out1 = out_flat[:M1, :E].reshape(B, N + 1, E)
    out0 = out1[:, 1:, :]
    return out0, out1


if __name__ == "__main__":
    # Small shapes consistent with the module (ViT patch embedding).
    B, C, H, W = 2, 4, 16, 16
    P = 4            # patch_size
    E = 32           # emb_size
    nH, nW = H // P, W // P
    N = nH * nW
    K = C * P * P

    key = jax.random.PRNGKey(0)
    kx, kw, kb, kc = jax.random.split(key, 4)
    x = jax.random.normal(kx, (B, C, H, W), dtype=jnp.float32)
    conv_w = 0.02 * jax.random.normal(kw, (E, C, P, P), dtype=jnp.float32)
    conv_b = 0.01 * jax.random.normal(kb, (E,), dtype=jnp.float32)
    cls_token = 0.02 * jax.random.normal(kc, (1, 1, E), dtype=jnp.float32)

    # tm=16 at these toy shapes exercises a multi-step pipelined grid; jit
    # lets allow_input_fusion fold the patch-extraction producer in.
    fwd = jax.jit(functools.partial(encoder_forward, patch_size=P, tm=16))
    out0, out1 = fwd(x, conv_w, conv_b, cls_token)
    out0 = jax.block_until_ready(out0)
    out1 = jax.block_until_ready(out1)

    # Reference: plain-JAX conv-as-matmul semantics.
    xp = x.reshape(B, C, nH, P, nW, P).transpose(0, 2, 4, 1, 3, 5)
    ref0 = (xp.reshape(B * N, K) @ conv_w.reshape(E, K).T + conv_b
            ).reshape(B, N, E)
    ref1 = jnp.concatenate(
        [jnp.broadcast_to(cls_token, (B, 1, E)), ref0], axis=1)

    assert out0.shape == (B, N, E) and out1.shape == (B, N + 1, E)
    assert jnp.allclose(out0, ref0, atol=2e-3, rtol=2e-3)
    assert jnp.allclose(out1, ref1, atol=2e-3, rtol=2e-3)

    print("KERNEL_OK")
</pallas_src>

<mosaic_0001>
module attributes {stable_mosaic.version = 11 : i64} {
  func.func @_proj_kernel(%arg0: i32, %arg1: memref<16x128xf32, #tpu.memory_space<vmem>>, %arg2: memref<128x128xf32, #tpu.memory_space<vmem>>, %arg3: memref<1x128xf32, #tpu.memory_space<vmem>>, %arg4: memref<1x128xf32, #tpu.memory_space<vmem>>, %arg5: memref<16x1xf32, #tpu.memory_space<vmem>>, %arg6: memref<16x128xf32, #tpu.memory_space<vmem>>) attributes {dimension_semantics = [#tpu.dimension_semantics<parallel>], iteration_bounds = array<i64: 3>, scalar_prefetch = 0 : i64, scratch_operands = 0 : i64, tpu.core_type = #tpu.core_type<tc>, window_params = [{transform_indices = @transform_0, window_bounds = array<i64: 16, 128>}, {pipeline_mode = #tpu.pipeline_mode<synchronous>, transform_indices = @transform_1, window_bounds = array<i64: 128, 128>}, {pipeline_mode = #tpu.pipeline_mode<synchronous>, transform_indices = @transform_2, window_bounds = array<i64: 1, 128>}, {pipeline_mode = #tpu.pipeline_mode<synchronous>, transform_indices = @transform_3, window_bounds = array<i64: 1, 128>}, {transform_indices = @transform_4, window_bounds = array<i64: 16, 1>}, {transform_indices = @transform_5, window_bounds = array<i64: 16, 128>}]} {
    %c0 = arith.constant 0 : index
    %c0_0 = arith.constant 0 : index
    %0 = vector.load %arg1[%c0, %c0_0] : memref<16x128xf32, #tpu.memory_space<vmem>>, vector<16x128xf32>
    %c0_1 = arith.constant 0 : index
    %c0_2 = arith.constant 0 : index
    %1 = vector.load %arg2[%c0_1, %c0_2] : memref<128x128xf32, #tpu.memory_space<vmem>>, vector<128x128xf32>
    %cst = arith.constant dense<0.000000e+00> : vector<16x128xf32>
    %2 = tpu.matmul %0, %1, %cst {dimension_numbers = #tpu.dot_dimension_numbers<[1], [0], [0], [1], [0, 0, 1, 1], [], []>} : vector<16x128xf32>, vector<128x128xf32>, vector<16x128xf32> -> vector<16x128xf32>
    %c0_3 = arith.constant 0 : index
    %c0_4 = arith.constant 0 : index
    %3 = vector.load %arg3[%c0_3, %c0_4] : memref<1x128xf32, #tpu.memory_space<vmem>>, vector<1x128xf32>
    %4 = vector.broadcast %3 : vector<1x128xf32> to vector<16x128xf32>
    %5 = arith.addf %2, %4 : vector<16x128xf32>
    %c0_5 = arith.constant 0 : index
    %c0_6 = arith.constant 0 : index
    %6 = vector.load %arg5[%c0_5, %c0_6] : memref<16x1xf32, #tpu.memory_space<vmem>>, vector<16x1xf32>
    %cst_7 = arith.constant 5.000000e-01 : f32
    %7 = vector.broadcast %cst_7 : f32 to vector<16x1xf32>
    %8 = arith.cmpf ogt, %6, %7 : vector<16x1xf32>
    %c0_8 = arith.constant 0 : index
    %c0_9 = arith.constant 0 : index
    %9 = vector.load %arg4[%c0_8, %c0_9] : memref<1x128xf32, #tpu.memory_space<vmem>>, vector<1x128xf32>
    %10 = vector.shape_cast %9 : vector<1x128xf32> to vector<1x128xf32>
    %11 = vector.broadcast %10 : vector<1x128xf32> to vector<16x128xf32>
    %12 = vector.shape_cast %8 : vector<16x1xi1> to vector<16x1xi1>
    %13 = vector.broadcast %12 : vector<16x1xi1> to vector<16x128xi1>
    %14 = arith.select %13, %11, %5 : vector<16x128xi1>, vector<16x128xf32>
    %c0_10 = arith.constant 0 : index
    %c0_11 = arith.constant 0 : index
    %15 = vector.load %arg6[%c0_10, %c0_11] : memref<16x128xf32, #tpu.memory_space<vmem>>, vector<16x128xf32>
    tpu.vector_store %arg6[%c0_10, %c0_11], %14 {strides = array<i32>} : memref<16x128xf32, #tpu.memory_space<vmem>>, vector<16x128xf32>,
    return
  }
  func.func @transform_0(%arg0: i32) -> (i32, i32) {
    %c0_i32 = arith.constant 0 : i32
    %c0_i32_0 = arith.constant 0 : i32
    return %arg0, %c0_i32 : i32, i32
  }
  func.func @transform_1(%arg0: i32) -> (i32, i32) {
    %c0_i32 = arith.constant 0 : i32
    %c0_i32_0 = arith.constant 0 : i32
    %c0_i32_1 = arith.constant 0 : i32
    return %c0_i32, %c0_i32_0 : i32, i32
  }
  func.func @transform_2(%arg0: i32) -> (i32, i32) {
    %c0_i32 = arith.constant 0 : i32
    %c0_i32_0 = arith.constant 0 : i32
    %c0_i32_1 = arith.constant 0 : i32
    return %c0_i32, %c0_i32_0 : i32, i32
  }
  func.func @transform_3(%arg0: i32) -> (i32, i32) {
    %c0_i32 = arith.constant 0 : i32
    %c0_i32_0 = arith.constant 0 : i32
    %c0_i32_1 = arith.constant 0 : i32
    return %c0_i32, %c0_i32_0 : i32, i32
  }
  func.func @transform_4(%arg0: i32) -> (i32, i32) {
    %c0_i32 = arith.constant 0 : i32
    %c0_i32_0 = arith.constant 0 : i32
    return %arg0, %c0_i32 : i32, i32
  }
  func.func @transform_5(%arg0: i32) -> (i32, i32) {
    %c0_i32 = arith.constant 0 : i32
    %c0_i32_0 = arith.constant 0 : i32
    return %arg0, %c0_i32 : i32, i32
  }
}

</mosaic_0001>

<bundles_post_ra>
// kernel: encoder_forward.2
= control target key start
LH: loop header
LB: loop body
LE: loop exit
PB: predicated region body
PF: predicated region fallthrough
CT: control target
= control target key end

     0   :  { %s671_s23 = smov 0   ;;  %s778_s0 = inlined_call_operand.vmem [shape: f32[128,128], index: 0, kind: input, shape index: {}]   ;;  %s779_s1 = inlined_call_operand.vmem [shape: f32[1,128], index: 1, kind: input, shape index: {}]   ;;  %s780_s2 = inlined_call_operand.vmem [shape: f32[1,128], index: 2, kind: input, shape index: {}]   ;;  %s781_s3 = inlined_call_operand.vmem [shape: f32[48,1], index: 3, kind: input, shape index: {}]   ;;  %s782_s4 = inlined_call_operand.vmem [shape: f32[34,128], index: 4, kind: input, shape index: {}]   ;;  %s783_s5 = inlined_call_operand.<no memory space> [shape: f32[], index: 5, kind: input, shape index: {}]   ;;  %s784_s6 = inlined_call_operand.vmem [shape: f32[48,128], index: 6, kind: output, shape index: {}]  }
   0x1   :  { %v669_v0 = vstv %s783_s5 }
   0x2 LB: > { %s504_s24 = sadd.s32 4294967295, %s628_s23   ;;  %p508_p0 = scmp.ge.s32.totalorder %s628_s23, 1  ;;  %s628_s23 = sphi %s671_s23, %s17_s23  }
   0x3   : > { %p209_p1 = scmp.lt.s32.totalorder %s628_s23, 4 }
   0x5   : > { %p210_p2 = pnand %p508_p0, %p209_p1 }
   0x6   : > { %v313_v1 = vld [vmem:[%s778_s0] sm:$0xff] (!%p210_p2)  ;;  %v314_v2 = vld [vmem:[%s778_s0 + $0x8] sm:$0xff] (!%p210_p2)  ;;  %v315_v3 = vld [vmem:[%s778_s0 + $0x10] sm:$0xff] (!%p210_p2)  ;;  %s688_s30 = sshll.u32 (!%p210_p2), %s504_s24, 1  ;;  %s690_s7 = sshll.u32 (!%p210_p2), %s504_s24, 4  ;;  %v281_v4 = vlaneseq (!%p210_p2)  ;;  %v630_v8 = vmov (!%p210_p2), 0  }
   0x7   : > { %213 = sbr.rel (%p210_p2) target bundleno = 258 (0x102), region = 40  ;;  %v580_v5 = vpack.c.bf16 (!%p210_p2), %v314_v2, %v313_v1  ;;  %v316_v6 = vld [vmem:[%s778_s0 + $0x18] sm:$0xff] (!%p210_p2)  ;;  %p251_p3 = scmp.lt.s32.totalorder (!%p210_p2), %s688_s30, 4  ;;  %v283_v7 = vstv (!%p210_p2), %s690_s7  ;;  %621 = vset.pattern.permute.xlu0 (!%p210_p2), %v630_v8  ;;  %v317_v10 = vld [vmem:[%s778_s0 + $0x20] sm:$0xff] (!%p210_p2)  ;;  %v318_v11 = vld [vmem:[%s778_s0 + $0x28] sm:$0xff] (!%p210_p2) }
   0x8   : > { %s272_s10 = ssub.s32 (!%p210_p2), 4, %s688_s30  ;;  %v584_v9 = vpack.c.bf16 (!%p210_p2), %v316_v6, %v315_v3  ;;  %v282_v13 = vshrl.u32 (!%p210_p2), %v281_v4, 7  ;;  %v588_v15 = vpack.c.bf16 (!%p210_p2), %v318_v11, %v317_v10  ;;  %v319_v16 = vld [vmem:[%s778_s0 + $0x30] sm:$0xff] (!%p210_p2)  ;;  %v320_v17 = vld [vmem:[%s778_s0 + $0x38] sm:$0xff] (!%p210_p2)  ;;  %p261_p5 = scmp.lt.s32.totalorder (!%p210_p2), %s688_s30, 5  ;;  %v321_v22 = vld [vmem:[%s778_s0 + $0x40] sm:$0xff] (!%p210_p2) }
   0x9   : > { %p704_p4 = scmp.lt.s32.totalorder (!%p210_p2), %s272_s10, 0  ;;  %v277_v12 = vstv (!%p210_p2), %s272_s10  ;;  %581 = vmatprep.subr.bf16.mxu0 (!%p210_p2), %v580_v5  ;;  %v592_v20 = vpack.c.bf16 (!%p210_p2), %v320_v17, %v319_v16  ;;  %v322_v23 = vld [vmem:[%s778_s0 + $0x48] sm:$0xff] (!%p210_p2)  ;;  %s290_s9 = sadd.s32 (!%p210_p2), 1, %s688_s30  ;;  %v323_v25 = vld [vmem:[%s778_s0 + $0x50] sm:$0xff] (!%p210_p2)  ;;  %v324_v26 = vld [vmem:[%s778_s0 + $0x58] sm:$0xff] (!%p210_p2) }
   0xa   : > { %583 = vmatpush3.bf16.msra.mxu0 (!%p210_p2), %v580_v5  ;;  %v284_v14 = vadd.s32 (!%p210_p2), %v283_v7, %v282_v13  ;;  %vm278_vm0 = vcmp.lt.s32.totalorder (!%p210_p2), %v277_v12, 0  ;;  %v596_v24 = vpack.c.bf16 (!%p210_p2), %v322_v23, %v321_v22  ;;  %v600_v30 = vpack.c.bf16 (!%p210_p2), %v324_v26, %v323_v25  ;;  %v325_v31 = vld [vmem:[%s778_s0 + $0x60] sm:$0xff] (!%p210_p2)  ;;  %v326_v32 = vld [vmem:[%s778_s0 + $0x68] sm:$0xff] (!%p210_p2)  ;;  %s525_s22 = sadd.s32 (!%p210_p2), 8, %s690_s7  ;;  %v327_v35 = vld [vmem:[%s778_s0 + $0x70] sm:$0xff] (!%p210_p2) }
   0xb   : > { %585 = vmatprep.subr.bf16.mxu0 (!%p210_p2), %v584_v9  ;;  %v604_v34 = vpack.c.bf16 (!%p210_p2), %v326_v32, %v325_v31  ;;  %v328_v36 = vld [vmem:[%s778_s0 + $0x78] sm:$0xff] (!%p210_p2)  ;;  %v304_v37 = vstv (!%p210_p2), %s525_s22  ;;  %v519_v45 = vld [vmem:[%s779_s1] ss:$0 sm:$0xff] (!%p210_p2) }
   0xc   : > { %vm285_vm1 = vcmp.lt.s32.totalorder (!%p210_p2), %v284_v14, 34  ;;  %v608_v39 = vpack.c.bf16 (!%p210_p2), %v328_v36, %v327_v35  ;;  %v305_v40 = vadd.s32 (!%p210_p2), %v304_v37, %v282_v13  ;;  %v520_v49 = vld [vmem:[%s780_s2] ss:$0 sm:$0xff] (!%p210_p2) }
   0xe   : > { %s252_s16 = scalar_select %p251_p3, %s688_s30, 4  ;;  %587 = vmatpush3.bf16.msra.mxu0 %v584_v9  ;;  %vm306_vm5 = vcmp.lt.s32.totalorder %v305_v40, 34 }
   0xf   : > { %s274_s17 = scalar_select %p704_p4, 0, 255  ;;  %589 = vmatprep.subr.bf16.mxu0 %v588_v15 }
  0x10   : > { %s510_s18 = sshll.u32 %s252_s16, 3 }
  0x11   : > { %s720_s26 = scalar_lea.vmem %s782_s4, %s510_s18 }
  0x12   : > { %v275_v18 = vld [vmem:[%s720_s26] sm:%s274_s17]  ;;  %s733_s8 = scalar_select %p261_p5, %s688_s30, 5  ;;  %591 = vmatpush3.bf16.msra.mxu0 %v588_v15 }
  0x13   : > { %v279_v19 = vsel %vm278_vm0, %v669_v0, %v275_v18  ;;  %593 = vmatprep.subr.bf16.mxu0 %v592_v20  ;;  %s291_s30 = ssub.s32 4, %s290_s9 }
  0x14   : > { %v286_v21 = vsel %vm285_vm1, %v279_v19, %v669_v0  ;;  %s513_s10 = sshll.u32 %s733_s8, 3  ;;  %p292_p6 = scmp.lt.s32.totalorder %s291_s30, 0  ;;  %v297_v38 = vstv %s291_s30 }
  0x15   : > { %577 = vmatprep.mubr.f32.mxu0 %v286_v21  ;;  %s264_s15 = scalar_lea.vmem %s781_s3, %s513_s10  ;;  %vm298_vm4 = vcmp.lt.s32.totalorder %v297_v38, 0  ;;  %s270_s13 = scalar_lea.vmem %s784_s6, %s513_s10 }
  0x16   : > { %v411_v27 = vld [vmem:[%s264_s15] sm:$0xff]  ;;  %v412_v28 = vld [vmem:[%s264_s15 + $0x8] sm:$0xff]  ;;  %595 = vmatpush3.bf16.msra.mxu0 %v592_v20  ;;  %s293_s28 = scalar_select %p292_p6, 0, 255 }
  0x17   : > { %vm413_vm2 = vcmp.gt.f32.partialorder %v411_v27, 0.5  ;;  %vm414_vm3 = vcmp.gt.f32.partialorder %v412_v28, 0.5  ;;  %597 = vmatprep.subr.bf16.mxu0 %v596_v24 }
  0x18   : > { %v422_v29 = vsel %vm413_vm2, 1, %v630_v8  ;;  %v423_v33 = vsel %vm414_vm3, 1, %v630_v8  ;;  %v517_v41 = vld [vmem:[%s720_s26 + $0x8] sm:%s293_s28] }
  0x19   : > { %425 = vperm.xlu0 %621, %v422_v29   ;;  %v299_v42 = vsel %vm298_vm4, %v669_v0, %v517_v41 }
  0x1a   : > { %599 = vmatpush3.bf16.msra.mxu0 %v596_v24  ;;  %v307_v43 = vsel %vm306_vm5, %v299_v42, %v669_v0 }
  0x1b   : > { %601 = vmatprep.subr.bf16.mxu0 %v600_v30 }
  0x1d   : > { %428 = vperm.xlu0 %621, %v423_v33  }
  0x1e   : > { %603 = vmatpush3.bf16.msra.mxu0 %v600_v30 }
  0x1f   : > { %605 = vmatprep.subr.bf16.mxu0 %v604_v34 }
  0x22   : > { %607 = vmatpush3.bf16.msra.mxu0 %v604_v34 }
  0x23   : > { %609 = vmatprep.subr.bf16.mxu0 %v608_v39 }
  0x26   : > { %611 = vmatpush3.bf16.msra.mxu0 %v608_v39 }
  0x29   : > { %578 = vmatmul.mubr.f32.vlgmr.msra.gmra.mrb[0].mxu0 %v307_v43 }
  0x98   : > { %v426_v44 = vpop.permute.xlu0 %425 }
  0x99   : > { %vm430_vm6 = vcmp.eq.s32.totalorder %v426_v44, 1 }
  0x9c   : > { %v429_v47 = vpop.permute.xlu0 %428 }
  0x9d   : > { %vm431_vm7 = vcmp.eq.s32.totalorder %v429_v47, 1 }
  0xfc   : > { %v579_v46 = vpop.f32.mrb[0].mxu0 }
  0xfd   : > { %v408_v48 = vadd.f32 %v579_v46, %v519_v45  ;;  %v402_v50 = vpop.f32.mrb[1].mxu0 }
  0xfe   : > { %v403_v51 = vadd.f32 %v519_v45, %v402_v50 }
  0xff   : > { %v433_v53 = vsel %vm431_vm7, %v520_v49, %v408_v48 }
 0x100   : > { %v432_v52 = vsel %vm430_vm6, %v520_v49, %v403_v51  ;;  %435 = vst [vmem:[%s270_s13 + $0x8] sm:$0xff] %v433_v53 }
 0x101   : > { %434 = vst [vmem:[%s270_s13] sm:$0xff] %v432_v52 }
 0x102 PF: > { %s17_s23 = sadd.s32 1, %s628_s23  }
 0x103   : > { %p14_p7 = scmp.ge.s32.totalorder %s17_s23, 5  }
 0x105   :  { %16 = sbr.rel (!%p14_p7) target bundleno = 2 (0x2), region = 75 }

</bundles_post_ra>
